<compile_context>
chip_gen: v7x
topology: tpu7x:2x2x1
jax: 0.10.0
libtpu: 0.0.40
codegen_flags: <defaults>
</compile_context>

<pallas_src>
import jax
import jax.numpy as jnp
from jax.experimental import pallas as pl
from jax.experimental.pallas import tpu as pltpu


def _round_up(x, m):
    return ((x + m - 1) // m) * m


def _pos_mlp_kernel(ids_ref, emb_ref, w1_ref, b1_ref, w2_ref, b2_ref,
                    wf_ref, bf_ref, o_ref):
    # ids_ref: [TB, W] int32        emb_ref: [Vp, E] f32 (vocab padded to 128)
    # w1_ref : [W*E, H1p]           b1_ref : [1, H1p]
    # w2_ref : [H1p, H2p]           b2_ref : [1, H2p]
    # wf_ref : [H2p, OUTp]          bf_ref : [1, OUTp]
    # o_ref  : [TB, OUTp]           (all padded dims are multiples of 128)
    ids = ids_ref[...]
    emb = emb_ref[...]
    w1 = w1_ref[...]
    TB, W = ids.shape
    Vp, E = emb.shape
    H1p = w1.shape[1]

    # Fused embedding gather + first Linear layer:
    #   embedded[:, w*E:(w+1)*E] = onehot(ids[:, w]) @ emb_table
    #   h1 += embedded_slice @ W1[w*E:(w+1)*E, :]
    # Both steps run on the MXU; no gather op, no reshape/concat relayout.
    vocab_iota = jax.lax.broadcasted_iota(jnp.int32, (TB, Vp), 1)
    acc = jnp.zeros((TB, H1p), jnp.float32)
    for w in range(W):  # static loop, W = p + s + 1 = 3
        onehot = (ids[:, w:w + 1] == vocab_iota).astype(jnp.float32)    # [TB, Vp]
        e_w = jnp.dot(onehot, emb, preferred_element_type=jnp.float32)  # [TB, E]
        acc = acc + jnp.dot(e_w, w1[w * E:(w + 1) * E, :],
                            preferred_element_type=jnp.float32)
    h = jnp.maximum(acc + b1_ref[...], 0.0)

    # hidden layer 2: ReLU(h @ W2 + b2)
    h = jnp.maximum(
        jnp.dot(h, w2_ref[...], preferred_element_type=jnp.float32) + b2_ref[...],
        0.0)

    # final layer (logits, no activation / softmax in forward()); lane-dense store.
    o_ref[...] = (
        jnp.dot(h, wf_ref[...], preferred_element_type=jnp.float32) + bf_ref[...])


def feedforward_nn_forward(x_ids, params):
    """Full forward pass: embedding gather + 2 hidden layers + final layer,
    all inside one Pallas kernel."""
    emb_table, w1, b1, w2, b2, wf, bf = params
    B, W = x_ids.shape
    vocab, E = emb_table.shape
    d_in = W * E
    h1, h2 = w1.shape[1], w2.shape[1]
    out_dim = wf.shape[1]

    # Lane-dense zero padding (preserves semantics: ReLU(0)=0 and zero weight
    # rows/cols contribute nothing). Padded columns are sliced off afterwards.
    LANE = 128
    Vp = _round_up(vocab, LANE)
    H1p = _round_up(h1, LANE)
    H2p = _round_up(h2, LANE)
    OUTp = _round_up(out_dim, LANE)

    emb_p = jnp.zeros((Vp, E), jnp.float32).at[:vocab, :].set(emb_table)
    w1_p = jnp.zeros((d_in, H1p), jnp.float32).at[:, :h1].set(w1)
    b1_p = jnp.zeros((1, H1p), jnp.float32).at[:, :h1].set(b1)
    w2_p = jnp.zeros((H1p, H2p), jnp.float32).at[:h1, :h2].set(w2)
    b2_p = jnp.zeros((1, H2p), jnp.float32).at[:, :h2].set(b2)
    wf_p = jnp.zeros((H2p, OUTp), jnp.float32).at[:h2, :out_dim].set(wf)
    bf_p = jnp.zeros((1, OUTp), jnp.float32).at[:, :out_dim].set(bf)

    # Batch grid: TB rows per grid step (multiple of 8 sublanes, capped so the
    # double-buffered activation tiles stay well inside v7x's 32 MiB scoped
    # VMEM). Weights/biases use index_map -> (0, 0) so they stay resident.
    TB = min(256, _round_up(B, 8))
    Bp = _round_up(B, TB)
    ids_p = jnp.zeros((Bp, W), jnp.int32).at[:B, :].set(x_ids.astype(jnp.int32))

    grid = (Bp // TB,)
    flops = 2 * Bp * (W * Vp * E + d_in * H1p + H1p * H2p + H2p * OUTp)
    param_bytes = 4 * (emb_p.size + w1_p.size + b1_p.size + w2_p.size
                       + b2_p.size + wf_p.size + bf_p.size)
    bytes_accessed = ids_p.size * 4 + Bp * OUTp * 4 + param_bytes

    out_p = pl.pallas_call(
        _pos_mlp_kernel,
        out_shape=jax.ShapeDtypeStruct((Bp, OUTp), jnp.float32),
        grid_spec=pltpu.PrefetchScalarGridSpec(
            num_scalar_prefetch=0,
            grid=grid,
            in_specs=[
                pl.BlockSpec((TB, W), lambda i: (i, 0)),       # token ids (tiled)
                pl.BlockSpec((Vp, E), lambda i: (0, 0)),       # embedding table
                pl.BlockSpec((d_in, H1p), lambda i: (0, 0)),   # W1 (resident)
                pl.BlockSpec((1, H1p), lambda i: (0, 0)),      # b1
                pl.BlockSpec((H1p, H2p), lambda i: (0, 0)),    # W2
                pl.BlockSpec((1, H2p), lambda i: (0, 0)),      # b2
                pl.BlockSpec((H2p, OUTp), lambda i: (0, 0)),   # Wf
                pl.BlockSpec((1, OUTp), lambda i: (0, 0)),     # bf
            ],
            out_specs=pl.BlockSpec((TB, OUTp), lambda i: (i, 0)),
        ),
        compiler_params=pltpu.CompilerParams(
            dimension_semantics=("parallel",),  # v7x: 2 TCs split the batch axis
        ),
        cost_estimate=pl.CostEstimate(
            flops=flops, transcendentals=0, bytes_accessed=bytes_accessed),
    )(ids_p, emb_p, w1_p, b1_p, w2_p, b2_p, wf_p, bf_p)

    # Strip batch padding and lane padding of the logits.
    return out_p[:B, :out_dim]


def init_params(key, vocab_size, embedding_dim, hidden_dims, output_dim, p=1, s=1):
    """Deterministic synthetic parameters (shapes match the nn.Module)."""
    window = p + s + 1
    d_in = window * embedding_dim
    k_emb, k_w1, k_b1, k_w2, k_b2, k_wf, k_bf = jax.random.split(key, 7)

    emb_table = jax.random.normal(k_emb, (vocab_size, embedding_dim), jnp.float32)
    # weights stored as [in, out] (transposed vs. torch's [out, in]) so the
    # kernel does x @ W + b.
    w1 = 0.1 * jax.random.normal(k_w1, (d_in, hidden_dims[0]), jnp.float32)
    b1 = 0.1 * jax.random.normal(k_b1, (1, hidden_dims[0]), jnp.float32)
    w2 = 0.1 * jax.random.normal(k_w2, (hidden_dims[0], hidden_dims[1]), jnp.float32)
    b2 = 0.1 * jax.random.normal(k_b2, (1, hidden_dims[1]), jnp.float32)
    wf = 0.1 * jax.random.normal(k_wf, (hidden_dims[1], output_dim), jnp.float32)
    bf = 0.1 * jax.random.normal(k_bf, (1, output_dim), jnp.float32)
    return (emb_table, w1, b1, w2, b2, wf, bf)


def _reference_forward(x_ids, params):
    """Pure-JAX reference for correctness check."""
    emb_table, w1, b1, w2, b2, wf, bf = params
    h = jnp.take(emb_table, x_ids, axis=0).reshape(x_ids.shape[0], -1)
    h = jnp.maximum(h @ w1 + b1, 0.0)
    h = jnp.maximum(h @ w2 + b2, 0.0)
    return h @ wf + bf


if __name__ == "__main__":
    # Small shapes consistent with the module: context window = p + s + 1 = 3.
    vocab_size = 50
    embedding_dim = 16
    hidden_dims = [32, 32]
    output_dim = 12
    p, s = 1, 1
    batch = 8

    key = jax.random.PRNGKey(0)
    k_params, k_x = jax.random.split(key)
    params = init_params(k_params, vocab_size, embedding_dim, hidden_dims,
                         output_dim, p=p, s=s)

    x_ids = jax.random.randint(k_x, (batch, p + s + 1), 0, vocab_size, jnp.int32)

    out = feedforward_nn_forward(x_ids, params)
    out = jax.block_until_ready(out)

    ref = _reference_forward(x_ids, params)
    assert out.shape == (batch, output_dim)
    assert jnp.allclose(out, ref, atol=1e-4, rtol=1e-4)

    print("KERNEL_OK")
</pallas_src>

<mosaic_0001>
module attributes {stable_mosaic.version = 11 : i64} {
  func.func @_pos_mlp_kernel(%arg0: i32, %arg1: memref<8x3xi32, #tpu.memory_space<vmem>>, %arg2: memref<128x16xf32, #tpu.memory_space<vmem>>, %arg3: memref<48x128xf32, #tpu.memory_space<vmem>>, %arg4: memref<1x128xf32, #tpu.memory_space<vmem>>, %arg5: memref<128x128xf32, #tpu.memory_space<vmem>>, %arg6: memref<1x128xf32, #tpu.memory_space<vmem>>, %arg7: memref<128x128xf32, #tpu.memory_space<vmem>>, %arg8: memref<1x128xf32, #tpu.memory_space<vmem>>, %arg9: memref<8x128xf32, #tpu.memory_space<vmem>>) attributes {dimension_semantics = [#tpu.dimension_semantics<parallel>], iteration_bounds = array<i64: 1>, scalar_prefetch = 0 : i64, scratch_operands = 0 : i64, tpu.core_type = #tpu.core_type<tc>, window_params = [{transform_indices = @transform_0, window_bounds = array<i64: 8, 3>}, {pipeline_mode = #tpu.pipeline_mode<synchronous>, transform_indices = @transform_1, window_bounds = array<i64: 128, 16>}, {pipeline_mode = #tpu.pipeline_mode<synchronous>, transform_indices = @transform_2, window_bounds = array<i64: 48, 128>}, {pipeline_mode = #tpu.pipeline_mode<synchronous>, transform_indices = @transform_3, window_bounds = array<i64: 1, 128>}, {pipeline_mode = #tpu.pipeline_mode<synchronous>, transform_indices = @transform_4, window_bounds = array<i64: 128, 128>}, {pipeline_mode = #tpu.pipeline_mode<synchronous>, transform_indices = @transform_5, window_bounds = array<i64: 1, 128>}, {pipeline_mode = #tpu.pipeline_mode<synchronous>, transform_indices = @transform_6, window_bounds = array<i64: 128, 128>}, {pipeline_mode = #tpu.pipeline_mode<synchronous>, transform_indices = @transform_7, window_bounds = array<i64: 1, 128>}, {transform_indices = @transform_8, window_bounds = array<i64: 8, 128>}]} {
    %c0 = arith.constant 0 : index
    %c0_0 = arith.constant 0 : index
    %0 = vector.load %arg1[%c0, %c0_0] : memref<8x3xi32, #tpu.memory_space<vmem>>, vector<8x3xi32>
    %c0_1 = arith.constant 0 : index
    %c0_2 = arith.constant 0 : index
    %1 = vector.load %arg2[%c0_1, %c0_2] : memref<128x16xf32, #tpu.memory_space<vmem>>, vector<128x16xf32>
    %c0_3 = arith.constant 0 : index
    %c0_4 = arith.constant 0 : index
    %2 = vector.load %arg3[%c0_3, %c0_4] : memref<48x128xf32, #tpu.memory_space<vmem>>, vector<48x128xf32>
    %3 = tpu.iota {dimensions = array<i32: 1>} : vector<8x128xi32>
    %cst = arith.constant 0.000000e+00 : f32
    %4 = vector.broadcast %cst : f32 to vector<8x128xf32>
    %5 = vector.extract_strided_slice %0 {offsets = [0, 0], sizes = [8, 1], strides = [1, 1]} : vector<8x3xi32> to vector<8x1xi32>
    %6 = vector.broadcast %5 : vector<8x1xi32> to vector<8x128xi32>
    %7 = arith.cmpi eq, %6, %3 : vector<8x128xi32>
    %8 = arith.extui %7 : vector<8x128xi1> to vector<8x128xi32>
    %9 = arith.sitofp %8 : vector<8x128xi32> to vector<8x128xf32>
    %cst_5 = arith.constant dense<0.000000e+00> : vector<8x16xf32>
    %10 = tpu.matmul %9, %1, %cst_5 {dimension_numbers = #tpu.dot_dimension_numbers<[1], [0], [0], [1], [0, 0, 1, 1], [], []>} : vector<8x128xf32>, vector<128x16xf32>, vector<8x16xf32> -> vector<8x16xf32>
    %11 = vector.extract_strided_slice %2 {offsets = [0, 0], sizes = [16, 128], strides = [1, 1]} : vector<48x128xf32> to vector<16x128xf32>
    %cst_6 = arith.constant dense<0.000000e+00> : vector<8x128xf32>
    %12 = tpu.matmul %10, %11, %cst_6 {dimension_numbers = #tpu.dot_dimension_numbers<[1], [0], [0], [1], [0, 0, 1, 1], [], []>} : vector<8x16xf32>, vector<16x128xf32>, vector<8x128xf32> -> vector<8x128xf32>
    %13 = arith.addf %4, %12 : vector<8x128xf32>
    %14 = vector.extract_strided_slice %0 {offsets = [0, 1], sizes = [8, 1], strides = [1, 1]} : vector<8x3xi32> to vector<8x1xi32>
    %15 = vector.broadcast %14 : vector<8x1xi32> to vector<8x128xi32>
    %16 = arith.cmpi eq, %15, %3 : vector<8x128xi32>
    %17 = arith.extui %16 : vector<8x128xi1> to vector<8x128xi32>
    %18 = arith.sitofp %17 : vector<8x128xi32> to vector<8x128xf32>
    %cst_7 = arith.constant dense<0.000000e+00> : vector<8x16xf32>
    %19 = tpu.matmul %18, %1, %cst_7 {dimension_numbers = #tpu.dot_dimension_numbers<[1], [0], [0], [1], [0, 0, 1, 1], [], []>} : vector<8x128xf32>, vector<128x16xf32>, vector<8x16xf32> -> vector<8x16xf32>
    %20 = vector.extract_strided_slice %2 {offsets = [16, 0], sizes = [16, 128], strides = [1, 1]} : vector<48x128xf32> to vector<16x128xf32>
    %cst_8 = arith.constant dense<0.000000e+00> : vector<8x128xf32>
    %21 = tpu.matmul %19, %20, %cst_8 {dimension_numbers = #tpu.dot_dimension_numbers<[1], [0], [0], [1], [0, 0, 1, 1], [], []>} : vector<8x16xf32>, vector<16x128xf32>, vector<8x128xf32> -> vector<8x128xf32>
    %22 = arith.addf %13, %21 : vector<8x128xf32>
    %23 = vector.extract_strided_slice %0 {offsets = [0, 2], sizes = [8, 1], strides = [1, 1]} : vector<8x3xi32> to vector<8x1xi32>
    %24 = vector.broadcast %23 : vector<8x1xi32> to vector<8x128xi32>
    %25 = arith.cmpi eq, %24, %3 : vector<8x128xi32>
    %26 = arith.extui %25 : vector<8x128xi1> to vector<8x128xi32>
    %27 = arith.sitofp %26 : vector<8x128xi32> to vector<8x128xf32>
    %cst_9 = arith.constant dense<0.000000e+00> : vector<8x16xf32>
    %28 = tpu.matmul %27, %1, %cst_9 {dimension_numbers = #tpu.dot_dimension_numbers<[1], [0], [0], [1], [0, 0, 1, 1], [], []>} : vector<8x128xf32>, vector<128x16xf32>, vector<8x16xf32> -> vector<8x16xf32>
    %29 = vector.extract_strided_slice %2 {offsets = [32, 0], sizes = [16, 128], strides = [1, 1]} : vector<48x128xf32> to vector<16x128xf32>
    %cst_10 = arith.constant dense<0.000000e+00> : vector<8x128xf32>
    %30 = tpu.matmul %28, %29, %cst_10 {dimension_numbers = #tpu.dot_dimension_numbers<[1], [0], [0], [1], [0, 0, 1, 1], [], []>} : vector<8x16xf32>, vector<16x128xf32>, vector<8x128xf32> -> vector<8x128xf32>
    %31 = arith.addf %22, %30 : vector<8x128xf32>
    %c0_11 = arith.constant 0 : index
    %c0_12 = arith.constant 0 : index
    %32 = vector.load %arg4[%c0_11, %c0_12] : memref<1x128xf32, #tpu.memory_space<vmem>>, vector<1x128xf32>
    %33 = vector.broadcast %32 : vector<1x128xf32> to vector<8x128xf32>
    %34 = arith.addf %31, %33 : vector<8x128xf32>
    %cst_13 = arith.constant 0.000000e+00 : f32
    %35 = vector.broadcast %cst_13 : f32 to vector<8x128xf32>
    %36 = arith.maximumf %34, %35 : vector<8x128xf32>
    %c0_14 = arith.constant 0 : index
    %c0_15 = arith.constant 0 : index
    %37 = vector.load %arg5[%c0_14, %c0_15] : memref<128x128xf32, #tpu.memory_space<vmem>>, vector<128x128xf32>
    %cst_16 = arith.constant dense<0.000000e+00> : vector<8x128xf32>
    %38 = tpu.matmul %36, %37, %cst_16 {dimension_numbers = #tpu.dot_dimension_numbers<[1], [0], [0], [1], [0, 0, 1, 1], [], []>} : vector<8x128xf32>, vector<128x128xf32>, vector<8x128xf32> -> vector<8x128xf32>
    %c0_17 = arith.constant 0 : index
    %c0_18 = arith.constant 0 : index
    %39 = vector.load %arg6[%c0_17, %c0_18] : memref<1x128xf32, #tpu.memory_space<vmem>>, vector<1x128xf32>
    %40 = vector.broadcast %39 : vector<1x128xf32> to vector<8x128xf32>
    %41 = arith.addf %38, %40 : vector<8x128xf32>
    %cst_19 = arith.constant 0.000000e+00 : f32
    %42 = vector.broadcast %cst_19 : f32 to vector<8x128xf32>
    %43 = arith.maximumf %41, %42 : vector<8x128xf32>
    %c0_20 = arith.constant 0 : index
    %c0_21 = arith.constant 0 : index
    %44 = vector.load %arg7[%c0_20, %c0_21] : memref<128x128xf32, #tpu.memory_space<vmem>>, vector<128x128xf32>
    %cst_22 = arith.constant dense<0.000000e+00> : vector<8x128xf32>
    %45 = tpu.matmul %43, %44, %cst_22 {dimension_numbers = #tpu.dot_dimension_numbers<[1], [0], [0], [1], [0, 0, 1, 1], [], []>} : vector<8x128xf32>, vector<128x128xf32>, vector<8x128xf32> -> vector<8x128xf32>
    %c0_23 = arith.constant 0 : index
    %c0_24 = arith.constant 0 : index
    %46 = vector.load %arg8[%c0_23, %c0_24] : memref<1x128xf32, #tpu.memory_space<vmem>>, vector<1x128xf32>
    %47 = vector.broadcast %46 : vector<1x128xf32> to vector<8x128xf32>
    %48 = arith.addf %45, %47 : vector<8x128xf32>
    %c0_25 = arith.constant 0 : index
    %c0_26 = arith.constant 0 : index
    %49 = vector.load %arg9[%c0_25, %c0_26] : memref<8x128xf32, #tpu.memory_space<vmem>>, vector<8x128xf32>
    tpu.vector_store %arg9[%c0_25, %c0_26], %48 {strides = array<i32>} : memref<8x128xf32, #tpu.memory_space<vmem>>, vector<8x128xf32>,
    return
  }
  func.func @transform_0(%arg0: i32) -> (i32, i32) {
    %c0_i32 = arith.constant 0 : i32
    %c0_i32_0 = arith.constant 0 : i32
    return %arg0, %c0_i32 : i32, i32
  }
  func.func @transform_1(%arg0: i32) -> (i32, i32) {
    %c0_i32 = arith.constant 0 : i32
    %c0_i32_0 = arith.constant 0 : i32
    %c0_i32_1 = arith.constant 0 : i32
    return %c0_i32, %c0_i32_0 : i32, i32
  }
  func.func @transform_2(%arg0: i32) -> (i32, i32) {
    %c0_i32 = arith.constant 0 : i32
    %c0_i32_0 = arith.constant 0 : i32
    %c0_i32_1 = arith.constant 0 : i32
    return %c0_i32, %c0_i32_0 : i32, i32
  }
  func.func @transform_3(%arg0: i32) -> (i32, i32) {
    %c0_i32 = arith.constant 0 : i32
    %c0_i32_0 = arith.constant 0 : i32
    %c0_i32_1 = arith.constant 0 : i32
    return %c0_i32, %c0_i32_0 : i32, i32
  }
  func.func @transform_4(%arg0: i32) -> (i32, i32) {
    %c0_i32 = arith.constant 0 : i32
    %c0_i32_0 = arith.constant 0 : i32
    %c0_i32_1 = arith.constant 0 : i32
    return %c0_i32, %c0_i32_0 : i32, i32
  }
  func.func @transform_5(%arg0: i32) -> (i32, i32) {
    %c0_i32 = arith.constant 0 : i32
    %c0_i32_0 = arith.constant 0 : i32
    %c0_i32_1 = arith.constant 0 : i32
    return %c0_i32, %c0_i32_0 : i32, i32
  }
  func.func @transform_6(%arg0: i32) -> (i32, i32) {
    %c0_i32 = arith.constant 0 : i32
    %c0_i32_0 = arith.constant 0 : i32
    %c0_i32_1 = arith.constant 0 : i32
    return %c0_i32, %c0_i32_0 : i32, i32
  }
  func.func @transform_7(%arg0: i32) -> (i32, i32) {
    %c0_i32 = arith.constant 0 : i32
    %c0_i32_0 = arith.constant 0 : i32
    %c0_i32_1 = arith.constant 0 : i32
    return %c0_i32, %c0_i32_0 : i32, i32
  }
  func.func @transform_8(%arg0: i32) -> (i32, i32) {
    %c0_i32 = arith.constant 0 : i32
    %c0_i32_0 = arith.constant 0 : i32
    return %arg0, %c0_i32 : i32, i32
  }
}

</mosaic_0001>

<bundles_post_ra>
// kernel: tpu_custom_call.1
= control target key start
LH: loop header
LB: loop body
LE: loop exit
PB: predicated region body
PF: predicated region fallthrough
CT: control target
= control target key end

     0   :  { %13 = vsyncpa [#allocation3], 0  ;;  %s1537_s0 = inlined_call_operand.vmem [shape: s32[8,3], index: 0, kind: input, shape index: {}]   ;;  %s1538_s1 = inlined_call_operand.vmem [shape: f32[128,16], index: 1, kind: input, shape index: {}]   ;;  %s1539_s2 = inlined_call_operand.hbm [shape: f32[48,128], index: 2, kind: input, shape index: {}]   ;;  %s1540_s3 = inlined_call_operand.vmem [shape: f32[1,128], index: 3, kind: input, shape index: {}]   ;;  %s1541_s4 = inlined_call_operand.vmem [shape: f32[128,128], index: 4, kind: input, shape index: {}]   ;;  %s1542_s5 = inlined_call_operand.vmem [shape: f32[1,128], index: 5, kind: input, shape index: {}]   ;;  %s1543_s6 = inlined_call_operand.hbm [shape: f32[128,128], index: 6, kind: input, shape index: {}]   ;;  %s1544_s7 = inlined_call_operand.vmem [shape: f32[1,128], index: 7, kind: input, shape index: {}]   ;;  %s1545_s8 = inlined_call_operand.hbm [shape: f32[8,128], index: 8, kind: output, shape index: {}]  }
   0x1   :  { %14 = vsyncpa [#allocation6], 0 }
   0x2   :  { %15 = vsyncpa [#allocation4], 0  ;;  %s1264_s27 = smov [#allocation2]   ;;  %s1192_s9 = scalar_lea.hbm %s1539_s2, 768 }
   0x3   :  { %s25_s28 = sshll.u32 %s1264_s27, 4  ;;  %p1193_p0 = scmp.ne.s32.totalorder %s1539_s2, %s1192_s9  ;;  %s26_s28 = int_to_ptr.vmem [resolvable:$true] %s25_s28 }
   0x4   :  { %p1196_p1 = scmp.lt.u32.totalorder %s1192_s9, %s1539_s2 }
   0x6   :  { %p1198_p2 = pnand %p1196_p1, %p1193_p0 }
   0x8   :  { %1201 = shalt.err (!%p1198_p2)
}
   0x9   :  { %s1202_s14 = scalar_lea.vmem %s26_s28, 768  ;;  %p1207_p4 = scmp.lt.s32.totalorder %s26_s28, %s26_s28 }
   0xa   :  { %p1203_p3 = scmp.ne.s32.totalorder %s26_s28, %s1202_s14  ;;  %p1208_p5 = scmp.lt.s32.totalorder %s1202_s14, %s1202_s14 }
   0xc   :  { %p1209_p6 = por %p1208_p5, %p1207_p4 }
   0xe   :  { %p1210_p7 = pnand %p1209_p6, %p1203_p3 }
  0x10   :  { %1213 = shalt.err (!%p1210_p7)
}
  0x11   :  { %s1265_s15 = smov 128   ;;  %s1266_s16 = smov 8  }
  0x12   :  { %31 = dma.hbm_to_vmem [thread:$0]  %s1539_s2, 768, %s26_s28, [#allocation3], %s1265_s15, %s1265_s15, %s1266_s16  }
  0x13   :  { %s1267_s19 = smov [#allocation5]   ;;  %s1214_s23 = scalar_lea.hbm %s1543_s6, 2048 }
  0x14   :  { %s43_s20 = sshll.u32 %s1267_s19, 4  ;;  %p1215_p8 = scmp.ne.s32.totalorder %s1543_s6, %s1214_s23  ;;  %s44_s20 = int_to_ptr.vmem [resolvable:$true] %s43_s20 }
  0x15   :  { %p1218_p9 = scmp.lt.u32.totalorder %s1214_s23, %s1543_s6 }
  0x17   :  { %p1220_p10 = pnand %p1218_p9, %p1215_p8 }
  0x19   :  { %1223 = shalt.err (!%p1220_p10)
}
  0x1a   :  { %s1224_s29 = scalar_lea.vmem %s44_s20, 2048  ;;  %p1229_p12 = scmp.lt.s32.totalorder %s44_s20, %s44_s20 }
  0x1b   :  { %p1225_p11 = scmp.ne.s32.totalorder %s44_s20, %s1224_s29  ;;  %p1230_p13 = scmp.lt.s32.totalorder %s1224_s29, %s1224_s29 }
  0x1d   :  { %p1231_p0 = por %p1230_p13, %p1229_p12 }
  0x1f   :  { %p1232_p1 = pnand %p1231_p0, %p1225_p11 }
  0x21   :  { %1235 = shalt.err (!%p1232_p1)
}
  0x22   :  { %49 = dma.hbm_to_vmem [thread:$0]  %s1543_s6, 2048, %s44_s20, [#allocation6], %s1265_s15, %s1265_s15, %s1266_s16  }
  0x23   :  { %1258 = dma.done.wait [#allocation3], 768  }
  0x24   :  { %1259 = vsyncadd [#allocation3], 4294966528 }
  0x25   :  { %1260 = dma.done.wait [#allocation6], 2048  }
  0x26   :  { %1261 = vsyncadd [#allocation6], 4294965248  ;;  %v1268_v0 = vmov 0   ;;  %v1269_v1 = vmov 2   ;;  %v1270_v2 = vmov 0.0|0.0   ;;  %v58_v3 = vld [vmem:[%s1537_s0] sm:$0xff]  ;;  %v81_v30 = vlaneseq }
  0x27   :  { %1188 = vset.pattern.permute.xlu0 %v1268_v0  ;;  %1190 = vset.pattern.permute.xlu1 %v1269_v1  ;;  %v59_v4 = vld [vmem:[%s1538_s1] sm:$0xff]  ;;  %v60_v5 = vld [vmem:[%s1538_s1 + $0x8] sm:$0xff]  ;;  %v61_v7 = vld [vmem:[%s1538_s1 + $0x10] sm:$0xff]  ;;  %vm1271_vm0 = vmmov 0   ;;  %v1272_v9 = vmov 0.0   ;;  %v1273_v13 = vmov 1  }
  0x28   :  { %1047 = vmatprep.subr.bf16.mxu0 %v1270_v2  ;;  %1071 = vmatprep.subr.bf16.mxu1 %v1270_v2  ;;  %v1356_v6 = vpack.c.bf16 %v60_v5, %v59_v4  ;;  %v62_v8 = vld [vmem:[%s1538_s1 + $0x18] sm:$0xff]  ;;  %v63_v11 = vld [vmem:[%s1538_s1 + $0x20] sm:$0xff]  ;;  %v64_v12 = vld [vmem:[%s1538_s1 + $0x28] sm:$0xff]  ;;  %v82_v31 = vand.u32 127, %v81_v30  ;;  %v1274_v33 = vmov 1.0   ;;  %vm235_vm4 = vcmask 130048  }
  0x29   :  { %84 = vperm.xlu0 %1188, %v58_v3   ;;  %383 = vperm.xlu1 %1190, %v58_v3   ;;  %v1369_v10 = vpack.c.bf16 %v62_v8, %v61_v7  ;;  %v1054_v14 = vpack.c.bf16 %v64_v12, %v63_v11  ;;  %v65_v15 = vld [vmem:[%s1538_s1 + $0x30] sm:$0xff]  ;;  %v66_v16 = vld [vmem:[%s1538_s1 + $0x38] sm:$0xff]  ;;  %v67_v18 = vld [vmem:[%s1538_s1 + $0x40] sm:$0xff]  ;;  %s1275_s24 = smov [#allocation7]  }
  0x2a   :  { %883 = vmatprep.mubr.msk.f32.mxu0 %vm1271_vm0, %v1272_v9  ;;  %918 = vmatprep.mubr.msk.f32.mxu1 %vm1271_vm0, %v1272_v9  ;;  %v1057_v17 = vpack.c.bf16 %v66_v16, %v65_v15  ;;  %v68_v19 = vld [vmem:[%s1538_s1 + $0x48] sm:$0xff]  ;;  %v69_v21 = vld [vmem:[%s1538_s1 + $0x50] sm:$0xff]  ;;  %v70_v22 = vld [vmem:[%s1538_s1 + $0x58] sm:$0xff]  ;;  %s735_s25 = sshll.u32 %s1275_s24, 4  ;;  %s736_s25 = int_to_ptr.vmem [resolvable:$true] %s735_s25 }
  0x2b   :  { %1049 = vmatpush3.bf16.msra.mxu0 %v1356_v6  ;;  %1073 = vmatpush3.bf16.msra.mxu1 %v1356_v6  ;;  %v1060_v20 = vpack.c.bf16 %v68_v19, %v67_v18  ;;  %v1063_v23 = vpack.c.bf16 %v70_v22, %v69_v21  ;;  %v71_v24 = vld [vmem:[%s1538_s1 + $0x60] sm:$0xff]  ;;  %v72_v25 = vld [vmem:[%s1538_s1 + $0x68] sm:$0xff]  ;;  %v73_v27 = vld [vmem:[%s1538_s1 + $0x70] sm:$0xff]  ;;  %s1236_s26 = scalar_lea.vmem %s736_s25, 128  ;;  %p1241_p3 = scmp.lt.s32.totalorder %s736_s25, %s736_s25 }
  0x2c   :  { %1050 = vmatprep.subr.bf16.mxu0 %v1270_v2  ;;  %1074 = vmatprep.subr.bf16.mxu1 %v1270_v2  ;;  %v1066_v26 = vpack.c.bf16 %v72_v25, %v71_v24  ;;  %v74_v28 = vld [vmem:[%s1538_s1 + $0x78] sm:$0xff]  ;;  %v77_v36 = vld [vmem:[#allocation2 + $0x10] sm:$0xff]  ;;  %v75_v40 = vld [vmem:[#allocation2] sm:$0xff]  ;;  %p1237_p2 = scmp.ne.s32.totalorder %s736_s25, %s1236_s26  ;;  %p1242_p4 = scmp.lt.s32.totalorder %s1236_s26, %s1236_s26 }
  0x2d   :  { %1189 = vset.pattern.permute.xlu0 %v1273_v13  ;;  %v1069_v29 = vpack.c.bf16 %v74_v28, %v73_v27  ;;  %v78_v37 = vld [vmem:[#allocation2 + $0x18] sm:$0xff]  ;;  %v76_v41 = vld [vmem:[#allocation2 + $0x8] sm:$0xff]  ;;  %v79_v44 = vld [vmem:[#allocation2 + $0x20] sm:$0xff] }
  0x2e   :  { %160 = vperm.xlu0 %1189, %v58_v3   ;;  %v1096_v38 = vpack.c.bf16 %v78_v37, %v77_v36  ;;  %v1099_v43 = vpack.c.bf16 %v76_v41, %v75_v40  ;;  %v80_v45 = vld [vmem:[#allocation2 + $0x28] sm:$0xff]  ;;  %v541_v51 = vld [vmem:[%s1541_s4] sm:$0xff]  ;;  %v543_v54 = vld [vmem:[%s1541_s4 + $0x10] sm:$0xff]  ;;  %p1243_p5 = por %p1242_p4, %p1241_p3 }
  0x2f   :  { %1052 = vmatpush3.bf16.msra.mxu0 %v1369_v10  ;;  %1076 = vmatpush3.bf16.msra.mxu1 %v1369_v10  ;;  %v1126_v48 = vpack.c.bf16 %v80_v45, %v79_v44  ;;  %v542_v52 = vld [vmem:[%s1541_s4 + $0x8] sm:$0xff]  ;;  %v544_v55 = vld [vmem:[%s1541_s4 + $0x18] sm:$0xff]  ;;  %v545_v57 = vld [vmem:[%s1541_s4 + $0x20] sm:$0xff] }
  0x30   :  { %1053 = vmatprep.subr.bf16.mxu0 %v1270_v2  ;;  %1077 = vmatprep.subr.bf16.mxu1 %v1270_v2  ;;  %v1129_v53 = vpack.c.bf16 %v542_v52, %v541_v51  ;;  %v1132_v56 = vpack.c.bf16 %v544_v55, %v543_v54  ;;  %v546_v58 = vld [vmem:[%s1541_s4 + $0x28] sm:$0xff]  ;;  %v547_v60 = vld [vmem:[%s1541_s4 + $0x30] sm:$0xff]  ;;  %v548_v61 = vld [vmem:[%s1541_s4 + $0x38] sm:$0xff]  ;;  %p1244_p6 = pnand %p1243_p5, %p1237_p2 }
  0x31   :  { %v1135_v59 = vpack.c.bf16 %v546_v58, %v545_v57  ;;  %v1138_v62 = vpack.c.bf16 %v548_v61, %v547_v60  ;;  %v549_v63 = vld [vmem:[%s1541_s4 + $0x40] sm:$0xff]  ;;  %v550_v0 = vld [vmem:[%s1541_s4 + $0x48] sm:$0xff]  ;;  %v551_v3 = vld [vmem:[%s1541_s4 + $0x50] sm:$0xff] }
  0x32   :  { %1191 = vset.pattern.permute.xlu0 %v1269_v1  ;;  %v1141_v1 = vpack.c.bf16 %v550_v0, %v549_v63  ;;  %v552_v4 = vld [vmem:[%s1541_s4 + $0x58] sm:$0xff]  ;;  %v554_v7 = vld [vmem:[%s1541_s4 + $0x68] sm:$0xff]  ;;  %v635_v12 = vld [vmem:[#allocation5] sm:$0xff] }
  0x33   :  { %1055 = vmatpush3.bf16.msra.mxu0 %v1054_v14  ;;  %1079 = vmatpush3.bf16.msra.mxu1 %v1054_v14  ;;  %v1144_v5 = vpack.c.bf16 %v552_v4, %v551_v3  ;;  %v636_v13 = vld [vmem:[#allocation5 + $0x8] sm:$0xff]  ;;  %v638_v16 = vld [vmem:[#allocation5 + $0x18] sm:$0xff]  ;;  %v639_v18 = vld [vmem:[#allocation5 + $0x20] sm:$0xff] }
  0x34   :  { %1056 = vmatprep.subr.bf16.mxu0 %v1270_v2  ;;  %1080 = vmatprep.subr.bf16.mxu1 %v1270_v2  ;;  %v1153_v15 = vpack.c.bf16 %v636_v13, %v635_v12  ;;  %v640_v19 = vld [vmem:[#allocation5 + $0x28] sm:$0xff]  ;;  %v641_v21 = vld [vmem:[#allocation5 + $0x30] sm:$0xff]  ;;  %v642_v22 = vld [vmem:[#allocation5 + $0x38] sm:$0xff] }
  0x35   :  { %v643_v24 = vld [vmem:[#allocation5 + $0x40] sm:$0xff]  ;;  %v644_v25 = vld [vmem:[#allocation5 + $0x48] sm:$0xff]  ;;  %v645_v27 = vld [vmem:[#allocation5 + $0x50] sm:$0xff] }
  0x36   :  { %v646_v28 = vld [vmem:[#allocation5 + $0x58] sm:$0xff]  ;;  %v647_v30 = vld [vmem:[#allocation5 + $0x60] sm:$0xff]  ;;  %v649_v44 = vld [vmem:[#allocation5 + $0x70] sm:$0xff] }
  0x37   :  { %1058 = vmatpush3.bf16.msra.mxu0 %v1057_v17  ;;  %1082 = vmatpush3.bf16.msra.mxu1 %v1057_v17  ;;  %v650_v45 = vld [vmem:[#allocation5 + $0x78] sm:$0xff]  ;;  %v756_v51 = vld [vmem:[%s1544_s7] ss:$0 sm:$0xff] }
  0x38   :  { %1059 = vmatprep.subr.bf16.mxu0 %v1270_v2  ;;  %1083 = vmatprep.subr.bf16.mxu1 %v1270_v2 }
  0x3b   :  { %1061 = vmatpush3.bf16.msra.mxu0 %v1060_v20  ;;  %1085 = vmatpush3.bf16.msra.mxu1 %v1060_v20 }
  0x3c   :  { %1062 = vmatprep.subr.bf16.mxu0 %v1270_v2  ;;  %1086 = vmatprep.subr.bf16.mxu1 %v1270_v2 }
  0x3f   :  { %1064 = vmatpush3.bf16.msra.mxu0 %v1063_v23  ;;  %1088 = vmatpush3.bf16.msra.mxu1 %v1063_v23 }
  0x40   :  { %1065 = vmatprep.subr.bf16.mxu0 %v1270_v2  ;;  %1089 = vmatprep.subr.bf16.mxu1 %v1270_v2 }
  0x43   :  { %1067 = vmatpush3.bf16.msra.mxu0 %v1066_v26  ;;  %1091 = vmatpush3.bf16.msra.mxu1 %v1066_v26 }
  0x44   :  { %1068 = vmatprep.subr.bf16.mxu0 %v1270_v2  ;;  %1092 = vmatprep.subr.bf16.mxu1 %v1270_v2 }
  0x47   :  { %1070 = vmatpush3.bf16.msra.mxu0 %v1069_v29  ;;  %1094 = vmatpush3.bf16.msra.mxu1 %v1069_v29 }
  0x48   :  { %1101 = vmatprep.subr.bf16.mxu0 %v1270_v2  ;;  %1095 = vmatprep.subr.bf16.mxu1 %v1270_v2 }
  0xa8   :  { %v85_v32 = vpop.permute.xlu0 %84  ;;  %v384_v35 = vpop.permute.xlu1 %383 }
  0xa9   :  { %vm86_vm1 = vcmp.eq.s32.totalorder %v85_v32, %v82_v31  ;;  %vm385_vm3 = vcmp.eq.s32.totalorder %v384_v35, %v82_v31 }
  0xaa   :  { %884 = vmatmul.mubr.msk.f32.vlgmr.msra.gmra.mrb[0].mxu0 %vm86_vm1, %v1274_v33 }
  0xab   :  { %1103 = vmatpush3.bf16.msra.mxu0 %v1356_v6  ;;  %967 = vmatprep.mubr.msk.f32.mxu0 %vm1271_vm0, %v1272_v9  ;;  %v553_v6 = vld [vmem:[%s1541_s4 + $0x60] sm:$0xff] }
  0xac   :  { %1104 = vmatprep.subr.bf16.mxu0 %v1270_v2  ;;  %v1147_v8 = vpack.c.bf16 %v554_v7, %v553_v6 }
  0xad   :  { %v161_v34 = vpop.permute.xlu0 %160 }
  0xae   :  { %vm162_vm2 = vcmp.eq.s32.totalorder %v161_v34, %v82_v31  ;;  %v648_v31 = vld [vmem:[#allocation5 + $0x68] sm:$0xff] }
  0xaf   :  { %1106 = vmatpush3.bf16.msra.mxu0 %v1369_v10  ;;  %919 = vmatmul.mubr.msk.f32.vlgmr.msra.gmra.mrb[0].mxu1 %vm162_vm2, %v1274_v33  ;;  %v556_v10 = vld [vmem:[%s1541_s4 + $0x78] sm:$0xff]  ;;  %v1171_v32 = vpack.c.bf16 %v648_v31, %v647_v30 }
  0xb0   :  { %1107 = vmatprep.subr.bf16.mxu0 %v1270_v2  ;;  %925 = vmatprep.mubr.msk.f32.mxu1 %vm1271_vm0, %v1272_v9 }
  0xb1   :  { %1097 = vmatpush3.bf16.msra.mxu1 %v1096_v38 }
  0xb2   :  { %1098 = vmatprep.subr.bf16.mxu1 %v1270_v2 }
  0xb3   :  { %1109 = vmatpush3.bf16.msra.mxu0 %v1054_v14  ;;  %v637_v14 = vld [vmem:[#allocation5 + $0x10] sm:$0xff] }
  0xb4   :  { %1110 = vmatprep.subr.bf16.mxu0 %v1270_v2 }
  0xb7   :  { %1112 = vmatpush3.bf16.msra.mxu0 %v1057_v17  ;;  %v1156_v17 = vpack.c.bf16 %v638_v16, %v637_v14 }
  0xb8   :  { %1113 = vmatprep.subr.bf16.mxu0 %v1270_v2 }
  0xbb   :  { %1115 = vmatpush3.bf16.msra.mxu0 %v1060_v20  ;;  %v1159_v20 = vpack.c.bf16 %v640_v19, %v639_v18 }
  0xbc   :  { %1116 = vmatprep.subr.bf16.mxu0 %v1270_v2 }
  0xbf   :  { %1118 = vmatpush3.bf16.msra.mxu0 %v1063_v23  ;;  %v1162_v23 = vpack.c.bf16 %v642_v22, %v641_v21 }
  0xc0   :  { %1119 = vmatprep.subr.bf16.mxu0 %v1270_v2 }
  0xc3   :  { %1121 = vmatpush3.bf16.msra.mxu0 %v1066_v26  ;;  %v1165_v26 = vpack.c.bf16 %v644_v25, %v643_v24 }
  0xc4   :  { %1122 = vmatprep.subr.bf16.mxu0 %v1270_v2 }
  0xc7   :  { %1124 = vmatpush3.bf16.msra.mxu0 %v1069_v29  ;;  %v1168_v29 = vpack.c.bf16 %v646_v28, %v645_v27 }
  0xc8   :  { %1152 = vmatprep.subr.bf16.mxu0 %v1270_v2 }
  0xca   :  { %968 = vmatmul.mubr.msk.f32.vlgmr.msra.gmra.mrb[2].mxu0 %vm385_vm3, %v1274_v33 }
  0xcb   :  { %1044 = vmatprep.mubr.msk.f32.mxu0 %vm1271_vm0, %v1272_v9  ;;  %1154 = vmatpush3.bf16.msra.mxu0 %v1153_v15 }
  0xcc   :  { %1155 = vmatprep.subr.bf16.mxu0 %v1270_v2 }
  0xcf   :  { %1157 = vmatpush3.bf16.msra.mxu0 %v1156_v17 }
  0xd0   :  { %1158 = vmatprep.subr.bf16.mxu0 %v1270_v2 }
  0xd3   :  { %1160 = vmatpush3.bf16.msra.mxu0 %v1159_v20 }
  0xd4   :  { %1161 = vmatprep.subr.bf16.mxu0 %v1270_v2 }
  0xd7   :  { %1163 = vmatpush3.bf16.msra.mxu0 %v1162_v23 }
  0xd8   :  { %1164 = vmatprep.subr.bf16.mxu0 %v1270_v2 }
  0xdb   :  { %1166 = vmatpush3.bf16.msra.mxu0 %v1165_v26 }
  0xdc   :  { %1167 = vmatprep.subr.bf16.mxu0 %v1270_v2 }
  0xdf   :  { %1169 = vmatpush3.bf16.msra.mxu0 %v1168_v29 }
  0xe0   :  { %1170 = vmatprep.subr.bf16.mxu0 %v1270_v2 }
  0xe3   :  { %1172 = vmatpush3.bf16.msra.mxu0 %v1171_v32 }
  0xe4   :  { %1173 = vmatprep.subr.bf16.mxu0 %v1270_v2 }
 0x17d   :  { %v155_v39 = vpop.f32.mrb[0].mxu0 }
 0x17e   :  { %v885_v42 = vpop.f32.mrb[1].mxu0 }
 0x182   :  { %v231_v46 = vpop.f32.mrb[0].mxu1 }
 0x183   :  { %926 = vmatmul.mubr.msk.f32.vlgmr.msra.gmra.mrb[2].mxu1 %vm235_vm4, %v231_v46  ;;  %v920_v47 = vpop.f32.mrb[1].mxu1  ;;  %v1174_v46 = vpack.c.bf16 %v650_v45, %v649_v44 }
 0x184   :  { %1100 = vmatpush3.bf16.msra.mxu1 %v1099_v43  ;;  %932 = vmatprep.mubr.msk.f32.mxu1 %vm1271_vm0, %v1272_v9 }
 0x185   :  { %1125 = vmatprep.subr.bf16.mxu1 %v1270_v2  ;;  %1175 = vmatpush3.bf16.msra.mxu0 %v1174_v46 }
 0x187   :  { %933 = vmatmul.mubr.msk.f32.vlgmr.msra.gmra.mrb[4].mxu1 %vm235_vm4, %v155_v39  ;;  %v754_v39 = vld [vmem:[%s1540_s3] ss:$0 sm:$0xff] }
 0x188   :  { %1127 = vmatpush3.bf16.msra.mxu1 %v1126_v48  ;;  %974 = vmatprep.mubr.msk.f32.mxu1 %vm1271_vm0, %v1272_v9 }
 0x189   :  { %1128 = vmatprep.subr.bf16.mxu1 %v1270_v2 }
 0x19d   :  { %v454_v49 = vpop.f32.mrb[2].mxu0 }
 0x19e   :  { %v969_v50 = vpop.f32.mrb[3].mxu0  ;;  %975 = vmatmul.mubr.msk.f32.vlgmr.msra.gmra.mrb[6].mxu1 %vm235_vm4, %v454_v49 }
 0x19f   :  { %1009 = vmatprep.mubr.msk.f32.mxu1 %vm1271_vm0, %v1272_v9  ;;  %1130 = vmatpush3.bf16.msra.mxu1 %v1129_v53  ;;  %v555_v9 = vld [vmem:[%s1541_s4 + $0x70] sm:$0xff] }
 0x1a0   :  { %1131 = vmatprep.subr.bf16.mxu1 %v1270_v2  ;;  %v1150_v11 = vpack.c.bf16 %v556_v10, %v555_v9 }
 0x1a3   :  { %1133 = vmatpush3.bf16.msra.mxu1 %v1132_v56 }
 0x1a4   :  { %1134 = vmatprep.subr.bf16.mxu1 %v1270_v2 }
 0x1a7   :  { %1136 = vmatpush3.bf16.msra.mxu1 %v1135_v59 }
 0x1a8   :  { %1137 = vmatprep.subr.bf16.mxu1 %v1270_v2 }
 0x1ab   :  { %1139 = vmatpush3.bf16.msra.mxu1 %v1138_v62 }
 0x1ac   :  { %1140 = vmatprep.subr.bf16.mxu1 %v1270_v2 }
 0x1af   :  { %1142 = vmatpush3.bf16.msra.mxu1 %v1141_v1 }
 0x1b0   :  { %1143 = vmatprep.subr.bf16.mxu1 %v1270_v2 }
 0x1b3   :  { %1145 = vmatpush3.bf16.msra.mxu1 %v1144_v5 }
 0x1b4   :  { %1146 = vmatprep.subr.bf16.mxu1 %v1270_v2 }
 0x1b7   :  { %1148 = vmatpush3.bf16.msra.mxu1 %v1147_v8 }
 0x1b8   :  { %1149 = vmatprep.subr.bf16.mxu1 %v1270_v2  ;;  %v755_v2 = vld [vmem:[%s1542_s5] ss:$0 sm:$0xff] }
 0x1bb   :  { %1151 = vmatpush3.bf16.msra.mxu1 %v1150_v11 }
 0x256   :  { %v305_v33 = vpop.f32.mrb[2].mxu1 }
 0x257   :  { %v927_v34 = vpop.f32.mrb[3].mxu1 }
 0x25a   :  { %v378_v35 = vpop.f32.mrb[4].mxu1 }
 0x25b   :  { %v379_v36 = vadd.f32 %v378_v35, %v305_v33  ;;  %v934_v37 = vpop.f32.mrb[5].mxu1 }
 0x271   :  { %v527_v38 = vpop.f32.mrb[6].mxu1 }
 0x272   :  { %v531_v40 = vadd.f32 %v527_v38, %v379_v36  ;;  %v976_v41 = vpop.f32.mrb[7].mxu1 }
 0x274   :  { %v539_v42 = vadd.f32 %v754_v39, %v531_v40 }
 0x276   :  { %v540_v43 = vmax.f32 %v539_v42, 0.0 }
 0x278   :  { %1010 = vmatmul.mubr.f32.vlgmr.msra.gmra.mrb[8].mxu1 %v540_v43 }
 0x34b   :  { %v630_v47 = vpop.f32.mrb[8].mxu1 }
 0x34c   :  { %v631_v48 = vadd.f32 %v755_v2, %v630_v47  ;;  %v1011_v49 = vpop.f32.mrb[9].mxu1 }
 0x34e   :  { %v634_v50 = vmax.f32 %v631_v48, 0.0 }
 0x350   :  { %1045 = vmatmul.mubr.f32.vlgmr.msra.gmra.mrb[4].mxu0 %v634_v50 }
 0x423   :  { %v724_v52 = vpop.f32.mrb[4].mxu0 }
 0x424   :  { %v725_v53 = vadd.f32 %v756_v51, %v724_v52  ;;  %v1046_v54 = vpop.f32.mrb[5].mxu0 }
 0x426   :  { %728 = vst [vmem:[#allocation7] sm:$0xff] %v725_v53 }
 0x427   :  { %1247 = shalt.err (!%p1244_p6)
}
 0x428   :  { %s1248_s29 = scalar_lea.hbm %s1545_s8, 128 }
 0x429   :  { %p1249_p7 = scmp.ne.s32.totalorder %s1545_s8, %s1248_s29  ;;  %p1252_p8 = scmp.lt.u32.totalorder %s1248_s29, %s1545_s8 }
 0x42b   :  { %p1254_p9 = pnand %p1252_p8, %p1249_p7 }
 0x42d   :  { %1257 = shalt.err (!%p1254_p9)
}
 0x42e   :  { %738 = dma.vmem_to_hbm [thread:$0]  %s736_s25, 128, %s1545_s8, [#allocation4]  }
 0x42f   :  { %1262 = dma.done.wait [#allocation4], 128  }
 0x430   :  { %1263 = vsyncadd [#allocation4], 4294967168 }
 0x431   :  { %742 = vsyncpa [#allocation3], 1 }
 0x432   :  { %743 = vsyncpa [#allocation6], 1 }
 0x433   :  { %744 = vsyncpa [#allocation4], 1 }

</bundles_post_ra>
